<compile_context>
chip_gen: v7x
topology: tpu7x:2x2x1
jax: 0.10.0
libtpu: 0.0.40
codegen_flags: <defaults>
</compile_context>

<pallas_src>
import jax
import jax.numpy as jnp
from jax import lax
from jax.experimental import pallas as pl
from jax.experimental.pallas import tpu as pltpu

IN_FEATURES = 3 * 64 * 64   # 12288
OUT_FEATURES = 6


def linear_kernel(x_ref, w_ref, b_ref, o_ref):
    # x: (B, K) f32, w: (N, K) bf16 (torch (out, in) orientation, lane-dense),
    # b: (1, N) f32  ->  o: (B, N) f32
    x_bf16 = x_ref[...].astype(jnp.bfloat16)          # VPU cast, x DMA stays f32
    y = lax.dot_general(
        x_bf16, w_ref[...],
        dimension_numbers=(((1,), (1,)), ((), ())),    # contract over K == x @ W.T
        preferred_element_type=jnp.float32,            # f32 accumulate on the MXU
    )
    o_ref[...] = y + b_ref[...]


def linear_classifier_forward(x_nchw, weight_nk_bf16, bias_n):
    """x_nchw: (B, 3, 64, 64) f32; weight: (6, 12288) bf16; bias: (6,) f32 -> (B, 6) f32."""
    B = x_nchw.shape[0]
    N, K = weight_nk_bf16.shape

    # Glue: flatten NCHW exactly like torch's x.view(B, -1) (row-major).
    x2d = x_nchw.reshape(B, K)
    bias_2d = bias_n.reshape(1, N)

    # Single invocation, everything VMEM-resident: no grid, no pipelining
    # machinery, no double buffers.  (~0.7 MiB total in VMEM at B=2.)
    return pl.pallas_call(
        linear_kernel,
        out_shape=jax.ShapeDtypeStruct((B, N), jnp.float32),
        in_specs=[
            pl.BlockSpec(memory_space=pltpu.MemorySpace.VMEM),   # x  (B, K)
            pl.BlockSpec(memory_space=pltpu.MemorySpace.VMEM),   # W  (N, K) bf16
            pl.BlockSpec(memory_space=pltpu.MemorySpace.VMEM),   # b  (1, N)
        ],
        out_specs=pl.BlockSpec(memory_space=pltpu.MemorySpace.VMEM),
    )(x2d, weight_nk_bf16, bias_2d)
    # TODO(synk): if B grows, reintroduce a leading batch grid axis marked
    # "parallel" (so v7x's two TensorCores split it), derive the row-tile size
    # from pltpu.get_tpu_info().vmem_capacity_bytes (<=~256 rows on v7x's
    # 64 MiB VMEM, 512-1024 on v5e/v6e), and make the output block lane-dense
    # (pad N to 128 or store (N, B) and transpose in the wrapper) to avoid
    # masked vst.msk partial stores.


def init_params(key):
    """Deterministic init matching torch.nn.Linear(12288, 6).

    Weight is kept in torch's native (out, in) = (6, 12288) layout (lane-dense
    K on the 128-lane axis) and cast to bf16: the kernel is DMA-bound and the
    weight is ~75% of HBM traffic, so bf16 halves the dominant DMA while the
    MXU still accumulates in f32.
    """
    kw, kb = jax.random.split(key)
    bound = 1.0 / (IN_FEATURES ** 0.5)  # torch default U(-1/sqrt(in), 1/sqrt(in))
    weight_f32 = jax.random.uniform(
        kw, (OUT_FEATURES, IN_FEATURES), jnp.float32, -bound, bound
    )
    bias_n = jax.random.uniform(
        kb, (OUT_FEATURES,), jnp.float32, -bound, bound
    )
    return weight_f32.astype(jnp.bfloat16), bias_n


if __name__ == "__main__":
    key = jax.random.PRNGKey(0)
    k_x, k_p = jax.random.split(key)

    B = 2
    x = jax.random.normal(k_x, (B, 3, 64, 64), jnp.float32)
    weight_nk_bf16, bias_n = init_params(k_p)

    out = linear_classifier_forward(x, weight_nk_bf16, bias_n)
    out = jax.block_until_ready(out)

    # Pure-JAX reference of the same math the kernel performs
    # (bf16 inputs, f32 MXU accumulation): torch semantics x.view(B,-1) @ W.T + b.
    x2d = x.reshape(B, -1)
    ref = lax.dot_general(
        x2d.astype(jnp.bfloat16), weight_nk_bf16,
        dimension_numbers=(((1,), (1,)), ((), ())),
        preferred_element_type=jnp.float32,
    ) + bias_n

    assert out.shape == (B, OUT_FEATURES), out.shape
    assert jnp.allclose(out, ref, atol=1e-2, rtol=1e-2), "mismatch vs reference"

    print("KERNEL_OK")
</pallas_src>

<mosaic_0001>
module attributes {stable_mosaic.version = 11 : i64} {
  func.func @linear_kernel(%arg0: memref<2x12288xf32, #tpu.memory_space<vmem>>, %arg1: memref<6x12288xbf16, #tpu.memory_space<vmem>>, %arg2: memref<1x6xf32, #tpu.memory_space<vmem>>, %arg3: memref<2x6xf32, #tpu.memory_space<vmem>>) attributes {dimension_semantics = [], scalar_prefetch = 0 : i64, scratch_operands = 0 : i64, tpu.core_type = #tpu.core_type<tc>} {
    %c0 = arith.constant 0 : index
    %c0_0 = arith.constant 0 : index
    %0 = vector.load %arg0[%c0, %c0_0] : memref<2x12288xf32, #tpu.memory_space<vmem>>, vector<2x12288xf32>
    %1 = arith.truncf %0 : vector<2x12288xf32> to vector<2x12288xbf16>
    %c0_1 = arith.constant 0 : index
    %c0_2 = arith.constant 0 : index
    %2 = vector.load %arg1[%c0_1, %c0_2] : memref<6x12288xbf16, #tpu.memory_space<vmem>>, vector<6x12288xbf16>
    %cst = arith.constant dense<0.000000e+00> : vector<2x6xf32>
    %3 = tpu.matmul %1, %2, %cst {dimension_numbers = #tpu.dot_dimension_numbers<[1], [1], [0], [0], [0, 0, 1, 0], [], []>} : vector<2x12288xbf16>, vector<6x12288xbf16>, vector<2x6xf32> -> vector<2x6xf32>
    %c0_3 = arith.constant 0 : index
    %c0_4 = arith.constant 0 : index
    %4 = vector.load %arg2[%c0_3, %c0_4] : memref<1x6xf32, #tpu.memory_space<vmem>>, vector<1x6xf32>
    %5 = vector.broadcast %4 : vector<1x6xf32> to vector<2x6xf32>
    %6 = arith.addf %3, %5 : vector<2x6xf32>
    %c0_5 = arith.constant 0 : index
    %c0_6 = arith.constant 0 : index
    %7 = vector.load %arg3[%c0_5, %c0_6] : memref<2x6xf32, #tpu.memory_space<vmem>>, vector<2x6xf32>
    tpu.vector_store %arg3[%c0_5, %c0_6], %6 {strides = array<i32>} : memref<2x6xf32, #tpu.memory_space<vmem>>, vector<2x6xf32>,
    return
  }
}

</mosaic_0001>

<bundles_post_ra>
// kernel: tpu_custom_call.1
= control target key start
LH: loop header
LB: loop body
LE: loop exit
PB: predicated region body
PF: predicated region fallthrough
CT: control target
= control target key end

     0   :  { %8 = vsyncpa [#allocation3], 0  ;;  %s3609_s0 = inlined_call_operand.hbm [shape: f32[2,12288], index: 0, kind: input, shape index: {}]   ;;  %s3610_s1 = inlined_call_operand.hbm [shape: bf16[6,12288], index: 1, kind: input, shape index: {}]   ;;  %s3611_s2 = inlined_call_operand.vmem [shape: f32[1,6], index: 2, kind: input, shape index: {}]   ;;  %s3612_s3 = inlined_call_operand.hbm [shape: f32[2,6], index: 3, kind: output, shape index: {}]  }
   0x1   :  { %9 = vsyncpa [#allocation6], 0 }
   0x2   :  { %10 = vsyncpa [#allocation4], 0  ;;  %s3496_s12 = smov [#allocation2]   ;;  %s3497_s14 = smov [#allocation5]  }
   0x3   :  { %s17_s13 = sshll.u32 %s3496_s12, 4  ;;  %s27_s15 = sshll.u32 %s3497_s14, 4  ;;  %s18_s13 = int_to_ptr.vmem [resolvable:$true] %s17_s13  ;;  %s28_s15 = int_to_ptr.vmem [resolvable:$true] %s27_s15 }
   0x4   :  { %s3424_s18 = scalar_lea.hbm %s3609_s0, 3072 }
   0x5   :  { %p3425_p0 = scmp.ne.s32.totalorder %s3609_s0, %s3424_s18  ;;  %p3428_p1 = scmp.lt.u32.totalorder %s3424_s18, %s3609_s0 }
   0x7   :  { %p3430_p2 = pnand %p3428_p1, %p3425_p0 }
   0x9   :  { %3433 = shalt.err (!%p3430_p2)
}
   0xa   :  { %s3434_s23 = scalar_lea.vmem %s18_s13, 3072  ;;  %p3439_p4 = scmp.lt.s32.totalorder %s18_s13, %s18_s13 }
   0xb   :  { %p3435_p3 = scmp.ne.s32.totalorder %s18_s13, %s3434_s23  ;;  %p3440_p5 = scmp.lt.s32.totalorder %s3434_s23, %s3434_s23 }
   0xd   :  { %p3441_p6 = por %p3440_p5, %p3439_p4 }
   0xf   :  { %p3442_p7 = pnand %p3441_p6, %p3435_p3 }
  0x11   :  { %3445 = shalt.err (!%p3442_p7)
}
  0x12   :  { %20 = dma.hbm_to_vmem [thread:$0]  %s3609_s0, 3072, %s18_s13, [#allocation3]  }
  0x13   :  { %s3446_s28 = scalar_lea.hbm %s3610_s1, 6144 }
  0x14   :  { %p3447_p8 = scmp.ne.s32.totalorder %s3610_s1, %s3446_s28  ;;  %p3450_p9 = scmp.lt.u32.totalorder %s3446_s28, %s3610_s1 }
  0x16   :  { %p3452_p10 = pnand %p3450_p9, %p3447_p8 }
  0x18   :  { %3455 = shalt.err (!%p3452_p10)
}
  0x19   :  { %s3456_s6 = scalar_lea.vmem %s28_s15, 6144  ;;  %p3461_p12 = scmp.lt.s32.totalorder %s28_s15, %s28_s15 }
  0x1a   :  { %p3457_p11 = scmp.ne.s32.totalorder %s28_s15, %s3456_s6  ;;  %p3462_p13 = scmp.lt.s32.totalorder %s3456_s6, %s3456_s6 }
  0x1c   :  { %p3463_p0 = por %p3462_p13, %p3461_p12 }
  0x1e   :  { %p3464_p1 = pnand %p3463_p0, %p3457_p11 }
  0x20   :  { %3467 = shalt.err (!%p3464_p1)
}
  0x21   :  { %30 = dma.hbm_to_vmem [thread:$0]  %s3610_s1, 6144, %s28_s15, [#allocation6]  }
  0x22   :  { %3490 = dma.done.wait [#allocation3], 3072  }
  0x23   :  { %3491 = vsyncadd [#allocation3], 4294964224 }
  0x24   :  { %3492 = dma.done.wait [#allocation6], 6144  }
  0x25   :  { %3493 = vsyncadd [#allocation6], 4294961152  ;;  %v92_v0 = vlaneseq  ;;  %v3498_v1 = vmov 1983009808   ;;  %v688_v6 = vld [vmem:[#allocation5] sm:$0x77] }
  0x26   :  { %v90_v2 = vunpack.c.l.s4 %v3498_v1  ;;  %v712_v7 = vld [vmem:[#allocation5 + $0xc0] sm:$0x77]  ;;  %v3019_v9 = vcombine.high %v688_v6, %v688_v6  ;;  %v3018_v11 = vcombine.low %v688_v6, %v688_v6  ;;  %v689_v14 = vld [vmem:[#allocation5 + $0x8] sm:$0x77]  ;;  %v690_v32 = vld [vmem:[#allocation5 + $0x10] sm:$0x77] }
  0x27   :  { %v93_v3 = vshrl.u32 %v92_v0, 7  ;;  %v40_v8 = vld [vmem:[#allocation2] sm:$0xff]  ;;  %v3067_v10 = vcombine.high %v712_v7, %v712_v7  ;;  %v3066_v12 = vcombine.low %v712_v7, %v712_v7  ;;  %v713_v19 = vld [vmem:[#allocation5 + $0xc8] sm:$0x77]  ;;  %v3021_v20 = vcombine.high %v689_v14, %v689_v14  ;;  %v714_v33 = vld [vmem:[#allocation5 + $0xd0] sm:$0x77] }
  0x28   :  { %v91_v4 = vunpack.c.0.s8 %v90_v2  ;;  %v52_v13 = vld [vmem:[#allocation2 + $0x60] sm:$0xff]  ;;  %v88_v15 = vcombine.high %v40_v8, %v40_v8  ;;  %1079 = vmatprep.subr.bf16.mxu1 %v3019_v9  ;;  %v3069_v23 = vcombine.high %v713_v19, %v713_v19  ;;  %v3020_v34 = vcombine.low %v689_v14, %v689_v14  ;;  %v41_v40 = vld [vmem:[#allocation2 + $0x8] sm:$0xff]  ;;  %v691_v48 = vld [vmem:[#allocation5 + $0x18] sm:$0x77]  ;;  %s3499_s9 = smov [#allocation7]  }
  0x29   :  { %v292_v17 = vcombine.high %v52_v13, %v52_v13  ;;  %2039 = vmatprep.subr.bf16.mxu0 %v3067_v10  ;;  %1080 = vmatpush1.bf16.xpose.msra.mxu1 %v3018_v11  ;;  %v3068_v35 = vcombine.low %v713_v19, %v713_v19  ;;  %v3023_v38 = vcombine.high %v690_v32, %v690_v32  ;;  %v53_v41 = vld [vmem:[#allocation2 + $0x68] sm:$0xff]  ;;  %v715_v49 = vld [vmem:[#allocation5 + $0xd8] sm:$0x77]  ;;  %v692_v0 = vld [vmem:[#allocation5 + $0x20] sm:$0x77]  ;;  %s3007_s10 = sshll.u32 %s3499_s9, 4  ;;  %s3008_s10 = int_to_ptr.vmem [resolvable:$true] %s3007_s10 }
  0x2a   :  { %v3544_v5 = vsub.s32 %v91_v4, %v93_v3  ;;  %2040 = vmatpush1.bf16.xpose.msra.mxu0 %v3066_v12  ;;  %1119 = vmatprep.subr.bf16.mxu1 %v3021_v20  ;;  %v3071_v39 = vcombine.high %v714_v33, %v714_v33  ;;  %v3022_v50 = vcombine.low %v690_v32, %v690_v32  ;;  %v716_v1 = vld [vmem:[#allocation5 + $0xe0] sm:$0x77]  ;;  %v42_v9 = vld [vmem:[#allocation2 + $0x10] sm:$0xff]  ;;  %vm2999_vm0 = vcmask 41984   ;;  %s3468_s11 = scalar_lea.vmem %s3008_s10, 32  ;;  %p3473_p3 = scmp.lt.s32.totalorder %s3008_s10, %s3008_s10 }
  0x2b   :  { %2079 = vmatprep.subr.bf16.mxu0 %v3069_v23  ;;  %v3070_v51 = vcombine.low %v714_v33, %v714_v33  ;;  %v105_v54 = vcombine.high %v41_v40, %v41_v40  ;;  %v309_v55 = vcombine.high %v53_v41, %v53_v41  ;;  %v3025_v56 = vcombine.high %v691_v48, %v691_v48  ;;  %v54_v10 = vld [vmem:[#allocation2 + $0x70] sm:$0xff]  ;;  %p3469_p2 = scmp.ne.s32.totalorder %s3008_s10, %s3468_s11  ;;  %p3474_p4 = scmp.lt.s32.totalorder %s3468_s11, %s3468_s11 }
  0x2c   :  { %v95_v16 = vrot.slane %v40_v8, %v3544_v5  ;;  %v299_v18 = vrot.slane %v52_v13, %v3544_v5  ;;  %v102_v24 = vrot.slane %v88_v15, %v3544_v5  ;;  %v306_v25 = vrot.slane %v292_v17, %v3544_v5  ;;  %v693_v17 = vld [vmem:[#allocation5 + $0x28] sm:$0x77]  ;;  %v694_v33 = vld [vmem:[#allocation5 + $0x30] sm:$0x77] }
  0x2d   :  { %v112_v42 = vrot.slane %v41_v40, %v3544_v5  ;;  %v316_v43 = vrot.slane %v53_v41, %v3544_v5  ;;  %v3073_v57 = vcombine.high %v715_v49, %v715_v49  ;;  %v119_v58 = vrot.slane %v105_v54, %v3544_v5  ;;  %v43_v41 = vld [vmem:[#allocation2 + $0x18] sm:$0xff]  ;;  %p3475_p5 = por %p3474_p4, %p3473_p3 }
  0x2e   :  { %v103_v21 = vcombine.high %v95_v16, %v95_v16  ;;  %v307_v22 = vcombine.high %v299_v18, %v299_v18  ;;  %v592_v28 = vpack.c.bf16 %v95_v16, %v95_v16  ;;  %v640_v29 = vpack.c.bf16 %v299_v18, %v299_v18  ;;  %v717_v18 = vld [vmem:[#allocation5 + $0xe8] sm:$0x77] }
  0x2f   :  { %v104_v30 = vcombine.high %v102_v24, %v102_v24  ;;  %v308_v31 = vcombine.high %v306_v25, %v306_v25  ;;  %v120_v44 = vcombine.high %v112_v42, %v112_v42  ;;  %v324_v45 = vcombine.high %v316_v43, %v316_v43  ;;  %p3476_p6 = pnand %p3475_p5, %p3469_p2 }
  0x30   :  { %v593_v26 = vpack.c.bf16 %v103_v21, %v103_v21  ;;  %v641_v27 = vpack.c.bf16 %v307_v22, %v307_v22  ;;  %v594_v46 = vpack.c.bf16 %v102_v24, %v102_v24  ;;  %v642_v47 = vpack.c.bf16 %v306_v25, %v306_v25 }
  0x31   :  { %v595_v36 = vpack.c.bf16 %v104_v30, %v104_v30  ;;  %v643_v37 = vpack.c.bf16 %v308_v31, %v308_v31  ;;  %v597_v52 = vpack.c.bf16 %v120_v44, %v120_v44  ;;  %v645_v53 = vpack.c.bf16 %v324_v45, %v324_v45 }
  0x32   :  { %1111 = vmatprep.mubr.bf16.mxu1 %v593_v26  ;;  %2071 = vmatprep.mubr.bf16.mxu0 %v641_v27  ;;  %v323_v59 = vrot.slane %v309_v55, %v3544_v5  ;;  %v121_v60 = vcombine.high %v119_v58, %v119_v58  ;;  %v596_v62 = vpack.c.bf16 %v112_v42, %v112_v42  ;;  %v55_v42 = vld [vmem:[#allocation2 + $0x78] sm:$0xff] }
  0x33   :  { %1112 = vmatmul.mubr.bf16.vlgmr.msra.gmra.mrb[0].mxu1 %v592_v28  ;;  %2072 = vmatmul.mubr.bf16.vlgmr.msra.gmra.mrb[0].mxu0 %v640_v29  ;;  %v644_v63 = vpack.c.bf16 %v316_v43, %v316_v43  ;;  %v3024_v2 = vcombine.low %v691_v48, %v691_v48  ;;  %v3072_v3 = vcombine.low %v715_v49, %v715_v49  ;;  %v695_v49 = vld [vmem:[#allocation5 + $0x38] sm:$0x77] }
  0x34   :  { %1120 = vmatpush1.bf16.xpose.msra.mxu1 %v3020_v34  ;;  %2080 = vmatpush1.bf16.xpose.msra.mxu0 %v3068_v35  ;;  %v325_v61 = vcombine.high %v323_v59, %v323_v59  ;;  %v599_v4 = vpack.c.bf16 %v121_v60, %v121_v60  ;;  %v3027_v7 = vcombine.high %v692_v0, %v692_v0  ;;  %v718_v34 = vld [vmem:[#allocation5 + $0xf0] sm:$0x77] }
  0x35   :  { %1151 = vmatprep.mubr.bf16.mxu1 %v595_v36  ;;  %2111 = vmatprep.mubr.bf16.mxu0 %v643_v37  ;;  %v3075_v8 = vcombine.high %v716_v1, %v716_v1  ;;  %v129_v11 = vrot.slane %v42_v9, %v3544_v5  ;;  %v333_v12 = vrot.slane %v54_v10, %v3544_v5 }
  0x36   :  { %1159 = vmatprep.subr.bf16.mxu1 %v3023_v38  ;;  %2119 = vmatprep.subr.bf16.mxu0 %v3071_v39  ;;  %v647_v6 = vpack.c.bf16 %v325_v61, %v325_v61  ;;  %v598_v15 = vpack.c.bf16 %v119_v58, %v119_v58  ;;  %v646_v16 = vpack.c.bf16 %v323_v59, %v323_v59 }
  0x37   :  { %v137_v13 = vcombine.high %v129_v11, %v129_v11  ;;  %v341_v14 = vcombine.high %v333_v12, %v333_v12  ;;  %v3026_v19 = vcombine.low %v692_v0, %v692_v0  ;;  %v3074_v20 = vcombine.low %v716_v1, %v716_v1  ;;  %v696_v1 = vld [vmem:[#allocation5 + $0x40] sm:$0x77] }
  0x38   :  { %v122_v23 = vcombine.high %v42_v9, %v42_v9  ;;  %v326_v24 = vcombine.high %v54_v10, %v54_v10  ;;  %v3029_v25 = vcombine.high %v693_v17, %v693_v17  ;;  %v3077_v26 = vcombine.high %v717_v18, %v717_v18  ;;  %v44_v10 = vld [vmem:[#allocation2 + $0x20] sm:$0xff] }
  0x39   :  { %v601_v21 = vpack.c.bf16 %v137_v13, %v137_v13  ;;  %v649_v22 = vpack.c.bf16 %v341_v14, %v341_v14  ;;  %v600_v31 = vpack.c.bf16 %v129_v11, %v129_v11  ;;  %v648_v32 = vpack.c.bf16 %v333_v12, %v333_v12  ;;  %v56_v11 = vld [vmem:[#allocation2 + $0x80] sm:$0xff] }
  0x3a   :  { %v136_v27 = vrot.slane %v122_v23, %v3544_v5  ;;  %v340_v28 = vrot.slane %v326_v24, %v3544_v5  ;;  %v3028_v35 = vcombine.low %v693_v17, %v693_v17  ;;  %v3076_v36 = vcombine.low %v717_v18, %v717_v18  ;;  %v697_v18 = vld [vmem:[#allocation5 + $0x48] sm:$0x77] }
  0x3b   :  { %v3031_v39 = vcombine.high %v694_v33, %v694_v33  ;;  %v3079_v40 = vcombine.high %v718_v34, %v718_v34  ;;  %v146_v43 = vrot.slane %v43_v41, %v3544_v5  ;;  %v350_v44 = vrot.slane %v55_v42, %v3544_v5 }
  0x3c   :  { %v138_v29 = vcombine.high %v136_v27, %v136_v27  ;;  %v342_v30 = vcombine.high %v340_v28, %v340_v28  ;;  %v650_v48 = vpack.c.bf16 %v340_v28, %v340_v28  ;;  %v139_v55 = vcombine.high %v43_v41, %v43_v41 }
  0x3d   :  { %v154_v45 = vcombine.high %v146_v43, %v146_v43  ;;  %v652_v0 = vpack.c.bf16 %v350_v44, %v350_v44  ;;  %v163_v12 = vrot.slane %v44_v10, %v3544_v5  ;;  %v367_v13 = vrot.slane %v56_v11, %v3544_v5 }
  0x3e   :  { %v603_v37 = vpack.c.bf16 %v138_v29, %v138_v29  ;;  %v651_v38 = vpack.c.bf16 %v342_v30, %v342_v30  ;;  %v153_v59 = vrot.slane %v139_v55, %v3544_v5  ;;  %v156_v24 = vcombine.high %v44_v10, %v44_v10 }
  0x3f   :  { %1152 = vmatmul.mubr.bf16.vlgmr.msra.gmra.mrb[0].mxu1 %v594_v46  ;;  %2112 = vmatmul.mubr.bf16.vlgmr.msra.gmra.mrb[0].mxu0 %v642_v47  ;;  %v358_v46 = vcombine.high %v350_v44, %v350_v44  ;;  %v602_v47 = vpack.c.bf16 %v136_v27, %v136_v27  ;;  %v171_v14 = vcombine.high %v163_v12, %v163_v12 }
  0x40   :  { %1160 = vmatpush1.bf16.xpose.msra.mxu1 %v3022_v50  ;;  %2120 = vmatpush1.bf16.xpose.msra.mxu0 %v3070_v51  ;;  %v719_v50 = vld [vmem:[#allocation5 + $0xf8] sm:$0x77]  ;;  %v3030_v51 = vcombine.low %v694_v33, %v694_v33  ;;  %v155_v61 = vcombine.high %v153_v59, %v153_v59  ;;  %v170_v28 = vrot.slane %v156_v24, %v3544_v5 }
  0x41   :  { %1191 = vmatprep.mubr.bf16.mxu1 %v597_v52  ;;  %2151 = vmatprep.mubr.bf16.mxu0 %v645_v53  ;;  %v3078_v52 = vcombine.low %v718_v34, %v718_v34  ;;  %v605_v53 = vpack.c.bf16 %v154_v45, %v154_v45  ;;  %v653_v54 = vpack.c.bf16 %v358_v46, %v358_v46  ;;  %v698_v34 = vld [vmem:[#allocation5 + $0x50] sm:$0x77] }
  0x42   :  { %1199 = vmatprep.subr.bf16.mxu1 %v3025_v56  ;;  %2159 = vmatprep.subr.bf16.mxu0 %v3073_v57  ;;  %v343_v56 = vcombine.high %v55_v42, %v55_v42  ;;  %v3033_v57 = vcombine.high %v695_v49, %v695_v49  ;;  %v3081_v58 = vcombine.high %v719_v50, %v719_v50  ;;  %v45_v42 = vld [vmem:[#allocation2 + $0x28] sm:$0xff] }
  0x43   :  { %v172_v30 = vcombine.high %v170_v28, %v170_v28  ;;  %v656_v33 = vpack.c.bf16 %v367_v13, %v367_v13  ;;  %v180_v44 = vrot.slane %v45_v42, %v3544_v5 }
  0x44   :  { %v357_v60 = vrot.slane %v343_v56, %v3544_v5  ;;  %v173_v56 = vcombine.high %v45_v42, %v45_v42 }
  0x45   :  { %v188_v46 = vcombine.high %v180_v44, %v180_v44 }
  0x46   :  { %v654_v17 = vpack.c.bf16 %v357_v60, %v357_v60 }
  0x4b   :  { %1192 = vmatmul.mubr.bf16.vlgmr.msra.gmra.mrb[0].mxu1 %v596_v62  ;;  %2152 = vmatmul.mubr.bf16.vlgmr.msra.gmra.mrb[0].mxu0 %v644_v63  ;;  %v359_v62 = vcombine.high %v357_v60, %v357_v60  ;;  %v604_v63 = vpack.c.bf16 %v146_v43, %v146_v43  ;;  %v57_v43 = vld [vmem:[#allocation2 + $0x88] sm:$0xff]  ;;  %v187_v60 = vrot.slane %v173_v56, %v3544_v5 }
  0x4c   :  { %1200 = vmatpush1.bf16.xpose.msra.mxu1 %v3024_v2  ;;  %2160 = vmatpush1.bf16.xpose.msra.mxu0 %v3072_v3  ;;  %v720_v2 = vld [vmem:[#allocation5 + $0x100] sm:$0x77]  ;;  %v3032_v3 = vcombine.low %v695_v49, %v695_v49  ;;  %v384_v45 = vrot.slane %v57_v43, %v3544_v5 }
  0x4d   :  { %1231 = vmatprep.mubr.bf16.mxu1 %v599_v4  ;;  %2191 = vmatprep.mubr.bf16.mxu0 %v647_v6  ;;  %v3080_v4 = vcombine.low %v719_v50, %v719_v50  ;;  %v607_v6 = vpack.c.bf16 %v155_v61, %v155_v61  ;;  %v3083_v9 = vcombine.high %v720_v2, %v720_v2  ;;  %v699_v50 = vld [vmem:[#allocation5 + $0x58] sm:$0x77] }
  0x4e   :  { %1239 = vmatprep.subr.bf16.mxu1 %v3027_v7  ;;  %2199 = vmatprep.subr.bf16.mxu0 %v3075_v8  ;;  %v655_v7 = vpack.c.bf16 %v359_v62, %v359_v62  ;;  %v3035_v8 = vcombine.high %v696_v1, %v696_v1  ;;  %v189_v62 = vcombine.high %v187_v60, %v187_v60 }
  0x57   :  { %1232 = vmatmul.mubr.bf16.vlgmr.msra.gmra.mrb[0].mxu1 %v598_v15  ;;  %2192 = vmatmul.mubr.bf16.vlgmr.msra.gmra.mrb[0].mxu0 %v646_v16  ;;  %v375_v15 = vcombine.high %v367_v13, %v367_v13  ;;  %v606_v16 = vpack.c.bf16 %v153_v59, %v153_v59 }
  0x58   :  { %1240 = vmatpush1.bf16.xpose.msra.mxu1 %v3026_v19  ;;  %2200 = vmatpush1.bf16.xpose.msra.mxu0 %v3074_v20  ;;  %v721_v19 = vld [vmem:[#allocation5 + $0x108] sm:$0x77]  ;;  %v3034_v20 = vcombine.low %v696_v1, %v696_v1  ;;  %v660_v1 = vpack.c.bf16 %v384_v45, %v384_v45 }
  0x59   :  { %1271 = vmatprep.mubr.bf16.mxu1 %v601_v21  ;;  %2231 = vmatprep.mubr.bf16.mxu0 %v649_v22  ;;  %v3082_v21 = vcombine.low %v720_v2, %v720_v2  ;;  %v609_v22 = vpack.c.bf16 %v171_v14, %v171_v14  ;;  %v657_v23 = vpack.c.bf16 %v375_v15, %v375_v15  ;;  %v700_v2 = vld [vmem:[#allocation5 + $0x60] sm:$0x77] }
  0x5a   :  { %1279 = vmatprep.subr.bf16.mxu1 %v3029_v25  ;;  %2239 = vmatprep.subr.bf16.mxu0 %v3077_v26  ;;  %v360_v25 = vcombine.high %v56_v11, %v56_v11  ;;  %v3037_v26 = vcombine.high %v697_v18, %v697_v18  ;;  %v3085_v27 = vcombine.high %v721_v19, %v721_v19  ;;  %v46_v11 = vld [vmem:[#allocation2 + $0x30] sm:$0xff] }
  0x5b   :  { %v197_v13 = vrot.slane %v46_v11, %v3544_v5 }
  0x5c   :  { %v374_v29 = vrot.slane %v360_v25, %v3544_v5  ;;  %v190_v25 = vcombine.high %v46_v11, %v46_v11 }
  0x5d   :  { %v205_v15 = vcombine.high %v197_v13, %v197_v13 }
  0x5e   :  { %v658_v49 = vpack.c.bf16 %v374_v29, %v374_v29 }
  0x63   :  { %1272 = vmatmul.mubr.bf16.vlgmr.msra.gmra.mrb[0].mxu1 %v600_v31  ;;  %2232 = vmatmul.mubr.bf16.vlgmr.msra.gmra.mrb[0].mxu0 %v648_v32  ;;  %v376_v31 = vcombine.high %v374_v29, %v374_v29  ;;  %v608_v32 = vpack.c.bf16 %v163_v12, %v163_v12  ;;  %v58_v12 = vld [vmem:[#allocation2 + $0x90] sm:$0xff]  ;;  %v204_v29 = vrot.slane %v190_v25, %v3544_v5 }
  0x64   :  { %1280 = vmatpush1.bf16.xpose.msra.mxu1 %v3028_v35  ;;  %2240 = vmatpush1.bf16.xpose.msra.mxu0 %v3076_v36  ;;  %v722_v35 = vld [vmem:[#allocation5 + $0x110] sm:$0x77]  ;;  %v3036_v36 = vcombine.low %v697_v18, %v697_v18  ;;  %v401_v14 = vrot.slane %v58_v12, %v3544_v5 }
  0x65   :  { %1311 = vmatprep.mubr.bf16.mxu1 %v603_v37  ;;  %2271 = vmatprep.mubr.bf16.mxu0 %v651_v38  ;;  %v3084_v37 = vcombine.low %v721_v19, %v721_v19  ;;  %v611_v38 = vpack.c.bf16 %v172_v30, %v172_v30  ;;  %v3087_v41 = vcombine.high %v722_v35, %v722_v35  ;;  %v701_v19 = vld [vmem:[#allocation5 + $0x68] sm:$0x77] }
  0x66   :  { %1319 = vmatprep.subr.bf16.mxu1 %v3031_v39  ;;  %2279 = vmatprep.subr.bf16.mxu0 %v3079_v40  ;;  %v659_v39 = vpack.c.bf16 %v376_v31, %v376_v31  ;;  %v3039_v40 = vcombine.high %v698_v34, %v698_v34  ;;  %v206_v31 = vcombine.high %v204_v29, %v204_v29 }
  0x6f   :  { %1312 = vmatmul.mubr.bf16.vlgmr.msra.gmra.mrb[0].mxu1 %v602_v47  ;;  %2272 = vmatmul.mubr.bf16.vlgmr.msra.gmra.mrb[0].mxu0 %v650_v48  ;;  %v392_v47 = vcombine.high %v384_v45, %v384_v45  ;;  %v610_v48 = vpack.c.bf16 %v170_v28, %v170_v28 }
  0x70   :  { %1320 = vmatpush1.bf16.xpose.msra.mxu1 %v3030_v51  ;;  %2280 = vmatpush1.bf16.xpose.msra.mxu0 %v3078_v52  ;;  %v723_v51 = vld [vmem:[#allocation5 + $0x118] sm:$0x77]  ;;  %v3038_v52 = vcombine.low %v698_v34, %v698_v34  ;;  %v664_v34 = vpack.c.bf16 %v401_v14, %v401_v14 }
  0x71   :  { %1351 = vmatprep.mubr.bf16.mxu1 %v605_v53  ;;  %2311 = vmatprep.mubr.bf16.mxu0 %v653_v54  ;;  %v3086_v53 = vcombine.low %v722_v35, %v722_v35  ;;  %v613_v54 = vpack.c.bf16 %v188_v46, %v188_v46  ;;  %v661_v55 = vpack.c.bf16 %v392_v47, %v392_v47  ;;  %v702_v35 = vld [vmem:[#allocation5 + $0x70] sm:$0x77] }
  0x72   :  { %1359 = vmatprep.subr.bf16.mxu1 %v3033_v57  ;;  %2319 = vmatprep.subr.bf16.mxu0 %v3081_v58  ;;  %v377_v57 = vcombine.high %v57_v43, %v57_v43  ;;  %v3041_v58 = vcombine.high %v699_v50, %v699_v50  ;;  %v3089_v59 = vcombine.high %v723_v51, %v723_v51  ;;  %v47_v43 = vld [vmem:[#allocation2 + $0x38] sm:$0xff] }
  0x73   :  { %v214_v45 = vrot.slane %v47_v43, %v3544_v5 }
  0x74   :  { %v391_v61 = vrot.slane %v377_v57, %v3544_v5  ;;  %v207_v57 = vcombine.high %v47_v43, %v47_v43 }
  0x75   :  { %v222_v47 = vcombine.high %v214_v45, %v214_v45 }
  0x76   :  { %v662_v18 = vpack.c.bf16 %v391_v61, %v391_v61 }
  0x7b   :  { %1352 = vmatmul.mubr.bf16.vlgmr.msra.gmra.mrb[0].mxu1 %v604_v63  ;;  %2312 = vmatmul.mubr.bf16.vlgmr.msra.gmra.mrb[0].mxu0 %v652_v0  ;;  %v393_v63 = vcombine.high %v391_v61, %v391_v61  ;;  %v612_v0 = vpack.c.bf16 %v180_v44, %v180_v44  ;;  %v59_v44 = vld [vmem:[#allocation2 + $0x98] sm:$0xff]  ;;  %v221_v61 = vrot.slane %v207_v57, %v3544_v5 }
  0x7c   :  { %1360 = vmatpush1.bf16.xpose.msra.mxu1 %v3032_v3  ;;  %2320 = vmatpush1.bf16.xpose.msra.mxu0 %v3080_v4  ;;  %v724_v3 = vld [vmem:[#allocation5 + $0x120] sm:$0x77]  ;;  %v3040_v4 = vcombine.low %v699_v50, %v699_v50  ;;  %v418_v46 = vrot.slane %v59_v44, %v3544_v5 }
  0x7d   :  { %1391 = vmatprep.mubr.bf16.mxu1 %v607_v6  ;;  %2351 = vmatprep.mubr.bf16.mxu0 %v655_v7  ;;  %v3088_v6 = vcombine.low %v723_v51, %v723_v51  ;;  %v615_v7 = vpack.c.bf16 %v189_v62, %v189_v62  ;;  %v3091_v10 = vcombine.high %v724_v3, %v724_v3  ;;  %v703_v51 = vld [vmem:[#allocation5 + $0x78] sm:$0x77] }
  0x7e   :  { %1399 = vmatprep.subr.bf16.mxu1 %v3035_v8  ;;  %2359 = vmatprep.subr.bf16.mxu0 %v3083_v9  ;;  %v663_v8 = vpack.c.bf16 %v393_v63, %v393_v63  ;;  %v3043_v9 = vcombine.high %v700_v2, %v700_v2  ;;  %v223_v63 = vcombine.high %v221_v61, %v221_v61 }
  0x87   :  { %1392 = vmatmul.mubr.bf16.vlgmr.msra.gmra.mrb[0].mxu1 %v606_v16  ;;  %2352 = vmatmul.mubr.bf16.vlgmr.msra.gmra.mrb[0].mxu0 %v654_v17  ;;  %v409_v16 = vcombine.high %v401_v14, %v401_v14  ;;  %v614_v17 = vpack.c.bf16 %v187_v60, %v187_v60 }
  0x88   :  { %1400 = vmatpush1.bf16.xpose.msra.mxu1 %v3034_v20  ;;  %2360 = vmatpush1.bf16.xpose.msra.mxu0 %v3082_v21  ;;  %v725_v20 = vld [vmem:[#allocation5 + $0x128] sm:$0x77]  ;;  %v3042_v21 = vcombine.low %v700_v2, %v700_v2  ;;  %v668_v2 = vpack.c.bf16 %v418_v46, %v418_v46 }
  0x89   :  { %1431 = vmatprep.mubr.bf16.mxu1 %v609_v22  ;;  %2391 = vmatprep.mubr.bf16.mxu0 %v657_v23  ;;  %v3090_v22 = vcombine.low %v724_v3, %v724_v3  ;;  %v617_v23 = vpack.c.bf16 %v205_v15, %v205_v15  ;;  %v665_v24 = vpack.c.bf16 %v409_v16, %v409_v16  ;;  %v704_v3 = vld [vmem:[#allocation5 + $0x80] sm:$0x77] }
  0x8a   :  { %1439 = vmatprep.subr.bf16.mxu1 %v3037_v26  ;;  %2399 = vmatprep.subr.bf16.mxu0 %v3085_v27  ;;  %v394_v26 = vcombine.high %v58_v12, %v58_v12  ;;  %v3045_v27 = vcombine.high %v701_v19, %v701_v19  ;;  %v3093_v28 = vcombine.high %v725_v20, %v725_v20  ;;  %v48_v12 = vld [vmem:[#allocation2 + $0x40] sm:$0xff] }
  0x8b   :  { %v231_v14 = vrot.slane %v48_v12, %v3544_v5 }
  0x8c   :  { %v408_v30 = vrot.slane %v394_v26, %v3544_v5  ;;  %v224_v26 = vcombine.high %v48_v12, %v48_v12 }
  0x8d   :  { %v239_v16 = vcombine.high %v231_v14, %v231_v14 }
  0x8e   :  { %v666_v50 = vpack.c.bf16 %v408_v30, %v408_v30 }
  0x93   :  { %1432 = vmatmul.mubr.bf16.vlgmr.msra.gmra.mrb[0].mxu1 %v608_v32  ;;  %2392 = vmatmul.mubr.bf16.vlgmr.msra.gmra.mrb[0].mxu0 %v656_v33  ;;  %v410_v32 = vcombine.high %v408_v30, %v408_v30  ;;  %v616_v33 = vpack.c.bf16 %v197_v13, %v197_v13  ;;  %v60_v13 = vld [vmem:[#allocation2 + $0xa0] sm:$0xff]  ;;  %v238_v30 = vrot.slane %v224_v26, %v3544_v5 }
  0x94   :  { %1440 = vmatpush1.bf16.xpose.msra.mxu1 %v3036_v36  ;;  %2400 = vmatpush1.bf16.xpose.msra.mxu0 %v3084_v37  ;;  %v726_v36 = vld [vmem:[#allocation5 + $0x130] sm:$0x77]  ;;  %v3044_v37 = vcombine.low %v701_v19, %v701_v19  ;;  %v435_v15 = vrot.slane %v60_v13, %v3544_v5 }
  0x95   :  { %1471 = vmatprep.mubr.bf16.mxu1 %v611_v38  ;;  %2431 = vmatprep.mubr.bf16.mxu0 %v659_v39  ;;  %v3092_v38 = vcombine.low %v725_v20, %v725_v20  ;;  %v619_v39 = vpack.c.bf16 %v206_v31, %v206_v31  ;;  %v3095_v42 = vcombine.high %v726_v36, %v726_v36  ;;  %v705_v20 = vld [vmem:[#allocation5 + $0x88] sm:$0x77] }
  0x96   :  { %1479 = vmatprep.subr.bf16.mxu1 %v3039_v40  ;;  %2439 = vmatprep.subr.bf16.mxu0 %v3087_v41  ;;  %v667_v40 = vpack.c.bf16 %v410_v32, %v410_v32  ;;  %v3047_v41 = vcombine.high %v702_v35, %v702_v35  ;;  %v240_v32 = vcombine.high %v238_v30, %v238_v30 }
  0x9f   :  { %1472 = vmatmul.mubr.bf16.vlgmr.msra.gmra.mrb[0].mxu1 %v610_v48  ;;  %2432 = vmatmul.mubr.bf16.vlgmr.msra.gmra.mrb[0].mxu0 %v658_v49  ;;  %v426_v48 = vcombine.high %v418_v46, %v418_v46  ;;  %v618_v49 = vpack.c.bf16 %v204_v29, %v204_v29 }
  0xa0   :  { %1480 = vmatpush1.bf16.xpose.msra.mxu1 %v3038_v52  ;;  %2440 = vmatpush1.bf16.xpose.msra.mxu0 %v3086_v53  ;;  %v727_v52 = vld [vmem:[#allocation5 + $0x138] sm:$0x77]  ;;  %v3046_v53 = vcombine.low %v702_v35, %v702_v35  ;;  %v672_v35 = vpack.c.bf16 %v435_v15, %v435_v15 }
  0xa1   :  { %1511 = vmatprep.mubr.bf16.mxu1 %v613_v54  ;;  %2471 = vmatprep.mubr.bf16.mxu0 %v661_v55  ;;  %v3094_v54 = vcombine.low %v726_v36, %v726_v36  ;;  %v621_v55 = vpack.c.bf16 %v222_v47, %v222_v47  ;;  %v669_v56 = vpack.c.bf16 %v426_v48, %v426_v48  ;;  %v706_v36 = vld [vmem:[#allocation5 + $0x90] sm:$0x77] }
  0xa2   :  { %1519 = vmatprep.subr.bf16.mxu1 %v3041_v58  ;;  %2479 = vmatprep.subr.bf16.mxu0 %v3089_v59  ;;  %v411_v58 = vcombine.high %v59_v44, %v59_v44  ;;  %v3049_v59 = vcombine.high %v703_v51, %v703_v51  ;;  %v3097_v60 = vcombine.high %v727_v52, %v727_v52  ;;  %v49_v44 = vld [vmem:[#allocation2 + $0x48] sm:$0xff] }
  0xa3   :  { %v248_v46 = vrot.slane %v49_v44, %v3544_v5 }
  0xa4   :  { %v425_v62 = vrot.slane %v411_v58, %v3544_v5  ;;  %v241_v58 = vcombine.high %v49_v44, %v49_v44 }
  0xa5   :  { %v256_v48 = vcombine.high %v248_v46, %v248_v46 }
  0xa6   :  { %v670_v19 = vpack.c.bf16 %v425_v62, %v425_v62 }
  0xab   :  { %1512 = vmatmul.mubr.bf16.vlgmr.msra.gmra.mrb[0].mxu1 %v612_v0  ;;  %2472 = vmatmul.mubr.bf16.vlgmr.msra.gmra.mrb[0].mxu0 %v660_v1  ;;  %v427_v0 = vcombine.high %v425_v62, %v425_v62  ;;  %v620_v1 = vpack.c.bf16 %v214_v45, %v214_v45  ;;  %v61_v45 = vld [vmem:[#allocation2 + $0xa8] sm:$0xff]  ;;  %v255_v62 = vrot.slane %v241_v58, %v3544_v5 }
  0xac   :  { %1520 = vmatpush1.bf16.xpose.msra.mxu1 %v3040_v4  ;;  %2480 = vmatpush1.bf16.xpose.msra.mxu0 %v3088_v6  ;;  %v728_v4 = vld [vmem:[#allocation5 + $0x140] sm:$0x77]  ;;  %v3048_v6 = vcombine.low %v703_v51, %v703_v51  ;;  %v452_v47 = vrot.slane %v61_v45, %v3544_v5 }
  0xad   :  { %1551 = vmatprep.mubr.bf16.mxu1 %v615_v7  ;;  %2511 = vmatprep.mubr.bf16.mxu0 %v663_v8  ;;  %v3096_v7 = vcombine.low %v727_v52, %v727_v52  ;;  %v623_v8 = vpack.c.bf16 %v223_v63, %v223_v63  ;;  %v3099_v11 = vcombine.high %v728_v4, %v728_v4  ;;  %v707_v52 = vld [vmem:[#allocation5 + $0x98] sm:$0x77] }
  0xae   :  { %1559 = vmatprep.subr.bf16.mxu1 %v3043_v9  ;;  %2519 = vmatprep.subr.bf16.mxu0 %v3091_v10  ;;  %v671_v9 = vpack.c.bf16 %v427_v0, %v427_v0  ;;  %v3051_v10 = vcombine.high %v704_v3, %v704_v3  ;;  %v257_v0 = vcombine.high %v255_v62, %v255_v62 }
  0xb7   :  { %1552 = vmatmul.mubr.bf16.vlgmr.msra.gmra.mrb[0].mxu1 %v614_v17  ;;  %2512 = vmatmul.mubr.bf16.vlgmr.msra.gmra.mrb[0].mxu0 %v662_v18  ;;  %v443_v17 = vcombine.high %v435_v15, %v435_v15  ;;  %v622_v18 = vpack.c.bf16 %v221_v61, %v221_v61 }
  0xb8   :  { %1560 = vmatpush1.bf16.xpose.msra.mxu1 %v3042_v21  ;;  %2520 = vmatpush1.bf16.xpose.msra.mxu0 %v3090_v22  ;;  %v729_v21 = vld [vmem:[#allocation5 + $0x148] sm:$0x77]  ;;  %v3050_v22 = vcombine.low %v704_v3, %v704_v3  ;;  %v676_v3 = vpack.c.bf16 %v452_v47, %v452_v47 }
  0xb9   :  { %1591 = vmatprep.mubr.bf16.mxu1 %v617_v23  ;;  %2551 = vmatprep.mubr.bf16.mxu0 %v665_v24  ;;  %v3098_v23 = vcombine.low %v728_v4, %v728_v4  ;;  %v625_v24 = vpack.c.bf16 %v239_v16, %v239_v16  ;;  %v673_v25 = vpack.c.bf16 %v443_v17, %v443_v17  ;;  %v708_v4 = vld [vmem:[#allocation5 + $0xa0] sm:$0x77] }
  0xba   :  { %1599 = vmatprep.subr.bf16.mxu1 %v3045_v27  ;;  %2559 = vmatprep.subr.bf16.mxu0 %v3093_v28  ;;  %v428_v27 = vcombine.high %v60_v13, %v60_v13  ;;  %v3053_v28 = vcombine.high %v705_v20, %v705_v20  ;;  %v3101_v29 = vcombine.high %v729_v21, %v729_v21  ;;  %v50_v13 = vld [vmem:[#allocation2 + $0x50] sm:$0xff] }
  0xbb   :  { %v265_v15 = vrot.slane %v50_v13, %v3544_v5 }
  0xbc   :  { %v442_v31 = vrot.slane %v428_v27, %v3544_v5  ;;  %v258_v27 = vcombine.high %v50_v13, %v50_v13 }
  0xbd   :  { %v273_v17 = vcombine.high %v265_v15, %v265_v15 }
  0xbe   :  { %v674_v51 = vpack.c.bf16 %v442_v31, %v442_v31 }
  0xc3   :  { %1592 = vmatmul.mubr.bf16.vlgmr.msra.gmra.mrb[0].mxu1 %v616_v33  ;;  %2552 = vmatmul.mubr.bf16.vlgmr.msra.gmra.mrb[0].mxu0 %v664_v34  ;;  %v444_v33 = vcombine.high %v442_v31, %v442_v31  ;;  %v624_v34 = vpack.c.bf16 %v231_v14, %v231_v14  ;;  %v62_v14 = vld [vmem:[#allocation2 + $0xb0] sm:$0xff]  ;;  %v272_v31 = vrot.slane %v258_v27, %v3544_v5 }
  0xc4   :  { %1600 = vmatpush1.bf16.xpose.msra.mxu1 %v3044_v37  ;;  %2560 = vmatpush1.bf16.xpose.msra.mxu0 %v3092_v38  ;;  %v730_v37 = vld [vmem:[#allocation5 + $0x150] sm:$0x77]  ;;  %v3052_v38 = vcombine.low %v705_v20, %v705_v20  ;;  %v469_v16 = vrot.slane %v62_v14, %v3544_v5 }
  0xc5   :  { %1631 = vmatprep.mubr.bf16.mxu1 %v619_v39  ;;  %2591 = vmatprep.mubr.bf16.mxu0 %v667_v40  ;;  %v3100_v39 = vcombine.low %v729_v21, %v729_v21  ;;  %v627_v40 = vpack.c.bf16 %v240_v32, %v240_v32  ;;  %v3103_v43 = vcombine.high %v730_v37, %v730_v37  ;;  %v709_v21 = vld [vmem:[#allocation5 + $0xa8] sm:$0x77] }
  0xc6   :  { %1639 = vmatprep.subr.bf16.mxu1 %v3047_v41  ;;  %2599 = vmatprep.subr.bf16.mxu0 %v3095_v42  ;;  %v675_v41 = vpack.c.bf16 %v444_v33, %v444_v33  ;;  %v3055_v42 = vcombine.high %v706_v36, %v706_v36  ;;  %v274_v33 = vcombine.high %v272_v31, %v272_v31 }
  0xcf   :  { %1632 = vmatmul.mubr.bf16.vlgmr.msra.gmra.mrb[0].mxu1 %v618_v49  ;;  %2592 = vmatmul.mubr.bf16.vlgmr.msra.gmra.mrb[0].mxu0 %v666_v50  ;;  %v460_v49 = vcombine.high %v452_v47, %v452_v47  ;;  %v626_v50 = vpack.c.bf16 %v238_v30, %v238_v30 }
  0xd0   :  { %1640 = vmatpush1.bf16.xpose.msra.mxu1 %v3046_v53  ;;  %2600 = vmatpush1.bf16.xpose.msra.mxu0 %v3094_v54  ;;  %v731_v53 = vld [vmem:[#allocation5 + $0x158] sm:$0x77]  ;;  %v3054_v54 = vcombine.low %v706_v36, %v706_v36  ;;  %v680_v36 = vpack.c.bf16 %v469_v16, %v469_v16 }
  0xd1   :  { %1671 = vmatprep.mubr.bf16.mxu1 %v621_v55  ;;  %2631 = vmatprep.mubr.bf16.mxu0 %v669_v56  ;;  %v3102_v55 = vcombine.low %v730_v37, %v730_v37  ;;  %v629_v56 = vpack.c.bf16 %v256_v48, %v256_v48  ;;  %v677_v57 = vpack.c.bf16 %v460_v49, %v460_v49  ;;  %v710_v37 = vld [vmem:[#allocation5 + $0xb0] sm:$0x77] }
  0xd2   :  { %1679 = vmatprep.subr.bf16.mxu1 %v3049_v59  ;;  %2639 = vmatprep.subr.bf16.mxu0 %v3097_v60  ;;  %v445_v59 = vcombine.high %v61_v45, %v61_v45  ;;  %v3057_v60 = vcombine.high %v707_v52, %v707_v52  ;;  %v3105_v61 = vcombine.high %v731_v53, %v731_v53  ;;  %v51_v45 = vld [vmem:[#allocation2 + $0x58] sm:$0xff] }
  0xd3   :  { %v282_v47 = vrot.slane %v51_v45, %v3544_v5 }
  0xd4   :  { %v459_v63 = vrot.slane %v445_v59, %v3544_v5  ;;  %v275_v59 = vcombine.high %v51_v45, %v51_v45 }
  0xd5   :  { %v290_v49 = vcombine.high %v282_v47, %v282_v47 }
  0xd6   :  { %v678_v20 = vpack.c.bf16 %v459_v63, %v459_v63 }
  0xdb   :  { %1672 = vmatmul.mubr.bf16.vlgmr.msra.gmra.mrb[0].mxu1 %v620_v1  ;;  %2632 = vmatmul.mubr.bf16.vlgmr.msra.gmra.mrb[0].mxu0 %v668_v2  ;;  %v461_v1 = vcombine.high %v459_v63, %v459_v63  ;;  %v628_v2 = vpack.c.bf16 %v248_v46, %v248_v46  ;;  %v63_v46 = vld [vmem:[#allocation2 + $0xb8] sm:$0xff]  ;;  %v289_v63 = vrot.slane %v275_v59, %v3544_v5 }
  0xdc   :  { %1680 = vmatpush1.bf16.xpose.msra.mxu1 %v3048_v6  ;;  %2640 = vmatpush1.bf16.xpose.msra.mxu0 %v3096_v7  ;;  %v732_v6 = vld [vmem:[#allocation5 + $0x160] sm:$0x77]  ;;  %v3056_v7 = vcombine.low %v707_v52, %v707_v52  ;;  %v486_v48 = vrot.slane %v63_v46, %v3544_v5 }
  0xdd   :  { %1711 = vmatprep.mubr.bf16.mxu1 %v623_v8  ;;  %2671 = vmatprep.mubr.bf16.mxu0 %v671_v9  ;;  %v3104_v8 = vcombine.low %v731_v53, %v731_v53  ;;  %v631_v9 = vpack.c.bf16 %v257_v0, %v257_v0  ;;  %v3107_v12 = vcombine.high %v732_v6, %v732_v6  ;;  %v711_v53 = vld [vmem:[#allocation5 + $0xb8] sm:$0x77] }
  0xde   :  { %1719 = vmatprep.subr.bf16.mxu1 %v3051_v10  ;;  %2679 = vmatprep.subr.bf16.mxu0 %v3099_v11  ;;  %v679_v10 = vpack.c.bf16 %v461_v1, %v461_v1  ;;  %v3059_v11 = vcombine.high %v708_v4, %v708_v4  ;;  %v291_v1 = vcombine.high %v289_v63, %v289_v63 }
  0xe7   :  { %1712 = vmatmul.mubr.bf16.vlgmr.msra.gmra.mrb[0].mxu1 %v622_v18  ;;  %2672 = vmatmul.mubr.bf16.vlgmr.msra.gmra.mrb[0].mxu0 %v670_v19  ;;  %v477_v18 = vcombine.high %v469_v16, %v469_v16  ;;  %v630_v19 = vpack.c.bf16 %v255_v62, %v255_v62 }
  0xe8   :  { %1720 = vmatpush1.bf16.xpose.msra.mxu1 %v3050_v22  ;;  %2680 = vmatpush1.bf16.xpose.msra.mxu0 %v3098_v23  ;;  %v733_v22 = vld [vmem:[#allocation5 + $0x168] sm:$0x77]  ;;  %v3058_v23 = vcombine.low %v708_v4, %v708_v4  ;;  %v684_v4 = vpack.c.bf16 %v486_v48, %v486_v48 }
  0xe9   :  { %1751 = vmatprep.mubr.bf16.mxu1 %v625_v24  ;;  %2711 = vmatprep.mubr.bf16.mxu0 %v673_v25  ;;  %v3106_v24 = vcombine.low %v732_v6, %v732_v6  ;;  %v633_v25 = vpack.c.bf16 %v273_v17, %v273_v17  ;;  %v681_v26 = vpack.c.bf16 %v477_v18, %v477_v18 }
  0xea   :  { %1759 = vmatprep.subr.bf16.mxu1 %v3053_v28  ;;  %2719 = vmatprep.subr.bf16.mxu0 %v3101_v29  ;;  %v462_v28 = vcombine.high %v62_v14, %v62_v14  ;;  %v3061_v29 = vcombine.high %v709_v21, %v709_v21  ;;  %v3109_v30 = vcombine.high %v733_v22, %v733_v22 }
  0xeb   :  { %v3064_v6 = vcombine.low %v711_v53, %v711_v53 }
  0xec   :  { %v476_v32 = vrot.slane %v462_v28, %v3544_v5 }
  0xee   :  { %v682_v52 = vpack.c.bf16 %v476_v32, %v476_v32 }
  0xf3   :  { %1752 = vmatmul.mubr.bf16.vlgmr.msra.gmra.mrb[0].mxu1 %v624_v34  ;;  %2712 = vmatmul.mubr.bf16.vlgmr.msra.gmra.mrb[0].mxu0 %v672_v35  ;;  %v478_v34 = vcombine.high %v476_v32, %v476_v32  ;;  %v632_v35 = vpack.c.bf16 %v265_v15, %v265_v15 }
  0xf4   :  { %1760 = vmatpush1.bf16.xpose.msra.mxu1 %v3052_v38  ;;  %2720 = vmatpush1.bf16.xpose.msra.mxu0 %v3100_v39  ;;  %v734_v38 = vld [vmem:[#allocation5 + $0x170] sm:$0x77]  ;;  %v3060_v39 = vcombine.low %v709_v21, %v709_v21 }
  0xf5   :  { %1791 = vmatprep.mubr.bf16.mxu1 %v627_v40  ;;  %2751 = vmatprep.mubr.bf16.mxu0 %v675_v41  ;;  %v3108_v40 = vcombine.low %v733_v22, %v733_v22  ;;  %v635_v41 = vpack.c.bf16 %v274_v33, %v274_v33  ;;  %v3111_v44 = vcombine.high %v734_v38, %v734_v38 }
  0xf6   :  { %1799 = vmatprep.subr.bf16.mxu1 %v3055_v42  ;;  %2759 = vmatprep.subr.bf16.mxu0 %v3103_v43  ;;  %v683_v42 = vpack.c.bf16 %v478_v34, %v478_v34  ;;  %v3063_v43 = vcombine.high %v710_v37, %v710_v37 }
  0xff   :  { %1792 = vmatmul.mubr.bf16.vlgmr.msra.gmra.mrb[0].mxu1 %v626_v50  ;;  %2752 = vmatmul.mubr.bf16.vlgmr.msra.gmra.mrb[0].mxu0 %v674_v51  ;;  %v494_v50 = vcombine.high %v486_v48, %v486_v48  ;;  %v634_v51 = vpack.c.bf16 %v272_v31, %v272_v31 }
 0x100   :  { %1800 = vmatpush1.bf16.xpose.msra.mxu1 %v3054_v54  ;;  %2760 = vmatpush1.bf16.xpose.msra.mxu0 %v3102_v55  ;;  %v735_v54 = vld [vmem:[#allocation5 + $0x178] sm:$0x77]  ;;  %v3062_v55 = vcombine.low %v710_v37, %v710_v37 }
 0x101   :  { %1831 = vmatprep.mubr.bf16.mxu1 %v629_v56  ;;  %2791 = vmatprep.mubr.bf16.mxu0 %v677_v57  ;;  %v3110_v56 = vcombine.low %v734_v38, %v734_v38  ;;  %v637_v57 = vpack.c.bf16 %v290_v49, %v290_v49  ;;  %v685_v58 = vpack.c.bf16 %v494_v50, %v494_v50 }
 0x102   :  { %1839 = vmatprep.subr.bf16.mxu1 %v3057_v60  ;;  %2799 = vmatprep.subr.bf16.mxu0 %v3105_v61  ;;  %v479_v60 = vcombine.high %v63_v46, %v63_v46  ;;  %v3065_v61 = vcombine.high %v711_v53, %v711_v53  ;;  %v3113_v62 = vcombine.high %v735_v54, %v735_v54 }
 0x104   :  { %v493_v0 = vrot.slane %v479_v60, %v3544_v5  ;;  %v3017_v5 = vld [vmem:[%s3611_s2] ss:$0 sm:$0xff] }
 0x10b   :  { %1832 = vmatmul.mubr.bf16.vlgmr.msra.gmra.mrb[0].mxu1 %v628_v2  ;;  %2792 = vmatmul.mubr.bf16.vlgmr.msra.gmra.mrb[0].mxu0 %v676_v3  ;;  %v495_v2 = vcombine.high %v493_v0, %v493_v0  ;;  %v636_v3 = vpack.c.bf16 %v282_v47, %v282_v47 }
 0x10c   :  { %1840 = vmatpush1.bf16.xpose.msra.mxu1 %v3056_v7  ;;  %2800 = vmatpush1.bf16.xpose.msra.mxu0 %v3104_v8  ;;  %v3112_v7 = vcombine.low %v735_v54, %v735_v54  ;;  %v639_v8 = vpack.c.bf16 %v291_v1, %v291_v1 }
 0x10d   :  { %1871 = vmatprep.mubr.bf16.mxu1 %v631_v9  ;;  %2831 = vmatprep.mubr.bf16.mxu0 %v679_v10  ;;  %v687_v9 = vpack.c.bf16 %v495_v2, %v495_v2  ;;  %v638_v10 = vpack.c.bf16 %v289_v63, %v289_v63 }
 0x10e   :  { %1879 = vmatprep.subr.bf16.mxu1 %v3059_v11  ;;  %2839 = vmatprep.subr.bf16.mxu0 %v3107_v12  ;;  %v686_v11 = vpack.c.bf16 %v493_v0, %v493_v0 }
 0x117   :  { %1872 = vmatmul.mubr.bf16.vlgmr.msra.gmra.mrb[0].mxu1 %v630_v19  ;;  %2832 = vmatmul.mubr.bf16.vlgmr.msra.gmra.mrb[0].mxu0 %v678_v20 }
 0x118   :  { %1880 = vmatpush1.bf16.xpose.msra.mxu1 %v3058_v23  ;;  %2840 = vmatpush1.bf16.xpose.msra.mxu0 %v3106_v24 }
 0x119   :  { %1911 = vmatprep.mubr.bf16.mxu1 %v633_v25  ;;  %2871 = vmatprep.mubr.bf16.mxu0 %v681_v26 }
 0x11a   :  { %1919 = vmatprep.subr.bf16.mxu1 %v3061_v29  ;;  %2879 = vmatprep.subr.bf16.mxu0 %v3109_v30 }
 0x123   :  { %1912 = vmatmul.mubr.bf16.vlgmr.msra.gmra.mrb[0].mxu1 %v632_v35  ;;  %2872 = vmatmul.mubr.bf16.vlgmr.msra.gmra.mrb[0].mxu0 %v680_v36 }
 0x124   :  { %1920 = vmatpush1.bf16.xpose.msra.mxu1 %v3060_v39  ;;  %2880 = vmatpush1.bf16.xpose.msra.mxu0 %v3108_v40 }
 0x125   :  { %1951 = vmatprep.mubr.bf16.mxu1 %v635_v41  ;;  %2911 = vmatprep.mubr.bf16.mxu0 %v683_v42 }
 0x126   :  { %1959 = vmatprep.subr.bf16.mxu1 %v3063_v43  ;;  %2919 = vmatprep.subr.bf16.mxu0 %v3111_v44 }
 0x12f   :  { %1952 = vmatmul.mubr.bf16.vlgmr.msra.gmra.mrb[0].mxu1 %v634_v51  ;;  %2912 = vmatmul.mubr.bf16.vlgmr.msra.gmra.mrb[0].mxu0 %v682_v52 }
 0x130   :  { %1960 = vmatpush1.bf16.xpose.msra.mxu1 %v3062_v55  ;;  %2920 = vmatpush1.bf16.xpose.msra.mxu0 %v3110_v56 }
 0x131   :  { %1991 = vmatprep.mubr.bf16.mxu1 %v637_v57  ;;  %2951 = vmatprep.mubr.bf16.mxu0 %v685_v58 }
 0x132   :  { %1999 = vmatprep.subr.bf16.mxu1 %v3065_v61  ;;  %2959 = vmatprep.subr.bf16.mxu0 %v3113_v62 }
 0x13b   :  { %1992 = vmatmul.mubr.bf16.vlgmr.msra.gmra.mrb[0].mxu1 %v636_v3  ;;  %2952 = vmatmul.mubr.bf16.vlgmr.msra.gmra.mrb[0].mxu0 %v684_v4 }
 0x13c   :  { %2000 = vmatpush1.bf16.xpose.msra.mxu1 %v3064_v6  ;;  %2960 = vmatpush1.bf16.xpose.msra.mxu0 %v3112_v7 }
 0x13d   :  { %2031 = vmatprep.mubr.bf16.mxu1 %v639_v8  ;;  %2991 = vmatprep.mubr.bf16.mxu0 %v687_v9 }
 0x147   :  { %2032 = vmatmul.mubr.bf16.vlgmr.msra.gmra.mrb[0].mxu1 %v638_v10  ;;  %2992 = vmatmul.mubr.bf16.vlgmr.msra.gmra.mrb[0].mxu0 %v686_v11 }
 0x21a   :  { %v2033_v12 = vpop.f32.mrb[0].mxu1  ;;  %v2993_v13 = vpop.f32.mrb[0].mxu0 }
 0x21b   :  { %v3114_v14 = vadd.f32 %v3017_v5, %v2033_v12  ;;  %v2035_v15 = vpop.f32.mrb[1].mxu1  ;;  %v2995_v16 = vpop.f32.mrb[1].mxu0 }
 0x21c   :  { %v2036_v17 = vpop.f32.mrb[2].mxu1  ;;  %v2996_v18 = vpop.f32.mrb[2].mxu0 }
 0x21d   :  { %v3115_v19 = vadd.f32 %v3114_v14, %v2993_v13  ;;  %v2037_v20 = vpop.f32.mrb[3].mxu1  ;;  %v2997_v21 = vpop.f32.mrb[3].mxu0 }
 0x21f   :  { %3000 = vst.msk [vmem:[#allocation7] sm:$0x3] %vm2999_vm0, %v3115_v19 }
 0x220   :  { %3479 = shalt.err (!%p3476_p6)
}
 0x221   :  { %s3480_s13 = scalar_lea.hbm %s3612_s3, 32 }
 0x222   :  { %p3481_p7 = scmp.ne.s32.totalorder %s3612_s3, %s3480_s13  ;;  %p3484_p8 = scmp.lt.u32.totalorder %s3480_s13, %s3612_s3 }
 0x224   :  { %p3486_p9 = pnand %p3484_p8, %p3481_p7 }
 0x226   :  { %3489 = shalt.err (!%p3486_p9)
}
 0x227   :  { %3010 = dma.vmem_to_hbm [thread:$0]  %s3008_s10, 32, %s3612_s3, [#allocation4]  }
 0x228   :  { %3494 = dma.done.wait [#allocation4], 32  }
 0x229   :  { %3495 = vsyncadd [#allocation4], 4294967264 }
 0x22a   :  { %3014 = vsyncpa [#allocation3], 1 }
 0x22b   :  { %3015 = vsyncpa [#allocation6], 1 }
 0x22c   :  { %3016 = vsyncpa [#allocation4], 1 }

</bundles_post_ra>
